<compile_context>
chip_gen: v7x
topology: tpu7x:2x2x1
jax: 0.10.0
libtpu: 0.0.40
codegen_flags: <defaults>
</compile_context>

<pallas_src>
import functools

import jax
import jax.numpy as jnp
from jax.experimental import pallas as pl
from jax.experimental.pallas import tpu as pltpu

_LANE = 128
_SUBLANE = 8
_MIN_GRID_STEPS = 4        # keep >= ~4 pipeline steps when the kernel is used
_XLA_BATCH_THRESHOLD = 1024  # below this, a 1-2 step grid is pure overhead


def _round_up(x, m):
    return ((x + m - 1) // m) * m


def _dae_kernel(x_ref, w_enc_ref, b_enc_ref, w_dec_ref, b_dec_ref, o_ref):
    """Fused DAE tile: o = ReLU(x @ W_enc + b_enc) @ W_dec + b_dec.

    x_ref:     [TB, D ]  f32  (raw input block; cast to bf16 in-kernel)
    w_enc_ref: [D,  Hp]  bf16 (VMEM-resident across grid)
    b_enc_ref: [1,  Hp]  f32
    w_dec_ref: [Hp, D ]  bf16 (VMEM-resident across grid)
    b_dec_ref: [1,  D ]  f32
    o_ref:     [TB, D ]  f32
    """
    x = x_ref[...].astype(jnp.bfloat16)                        # cast hidden under DMA
    h = jnp.dot(x, w_enc_ref[...],
                preferred_element_type=jnp.float32)            # [TB, Hp] f32 acc, K=D
    h = jnp.maximum(h + b_enc_ref[...], 0.0)                   # bias + ReLU in f32
    y = jnp.dot(h.astype(jnp.bfloat16), w_dec_ref[...],
                preferred_element_type=jnp.float32)            # [TB, D] f32 acc
    o_ref[...] = y + b_dec_ref[...]


@functools.partial(jax.jit, static_argnames=("tb",))
def _dae_forward_pallas(x, w_enc_p, b_enc_p, w_dec_p, b_dec_p, tb):
    """x: [B, D] f32 (no feature padding).  Returns [B, D] f32."""
    B, D = x.shape
    Hp = w_enc_p.shape[1]

    # Batch tile: multiple of 8 sublanes, capped at tb, and small enough that
    # the grid keeps >= _MIN_GRID_STEPS steps (pipelining / megacore).
    tb_eff = min(tb, _round_up(pl.cdiv(B, _MIN_GRID_STEPS), _SUBLANE))
    grid = (pl.cdiv(B, tb_eff),)   # partial final block masked by Pallas

    out = pl.pallas_call(
        _dae_kernel,
        out_shape=jax.ShapeDtypeStruct((B, D), jnp.float32),
        grid_spec=pltpu.PrefetchScalarGridSpec(
            num_scalar_prefetch=0,
            grid=grid,
            in_specs=[
                # x streams over the batch grid; last dim == full array dim.
                pl.BlockSpec((tb_eff, D), lambda i: (i, 0)),
                # Weights / biases: constant block index -> DMA'd once,
                # VMEM-resident for every grid step.
                pl.BlockSpec((D, Hp), lambda i: (0, 0)),
                pl.BlockSpec((1, Hp), lambda i: (0, 0)),
                pl.BlockSpec((Hp, D), lambda i: (0, 0)),
                pl.BlockSpec((1, D), lambda i: (0, 0)),
            ],
            out_specs=pl.BlockSpec((tb_eff, D), lambda i: (i, 0)),
        ),
        compiler_params=pltpu.CompilerParams(
            dimension_semantics=("parallel",)),   # lets v7x split steps over 2 TCs
    )(x, w_enc_p, b_enc_p, w_dec_p, b_dec_p)

    return out


def _dae_forward_xla(x, w_enc_p, b_enc_p, w_dec_p, b_dec_p):
    """Same math in plain XLA (small-batch fallback / numerics reference)."""
    h = jnp.dot(x.astype(jnp.bfloat16), w_enc_p,
                preferred_element_type=jnp.float32)
    h = jnp.maximum(h + b_enc_p, 0.0)
    y = jnp.dot(h.astype(jnp.bfloat16), w_dec_p,
                preferred_element_type=jnp.float32)
    return y + b_dec_p


class DAEWithARPallas:
    """JAX/Pallas analogue of DAEWithAR (stand-in dae = 2-layer MLP)."""

    def __init__(self, decoder_dim=32, hidden_dim=64, key=None, batch_tile=512):
        if key is None:
            key = jax.random.PRNGKey(42)
        k_enc, k_dec, k_benc, k_bdec, k_aff = jax.random.split(key, 5)
        self.decoder_dim = decoder_dim
        self.hidden_dim = hidden_dim
        self.batch_tile = batch_tile

        D, H = decoder_dim, hidden_dim
        Hp = _round_up(H, _LANE)
        self.Hp = Hp

        # Deterministic synthetic parameters (no checkpoint load); nn.Linear-
        # style U(-1/sqrt(fan_in), 1/sqrt(fan_in)) init, nonzero biases.
        s_enc = 1.0 / jnp.sqrt(jnp.float32(D))
        s_dec = 1.0 / jnp.sqrt(jnp.float32(H))
        w_enc = jax.random.uniform(k_enc, (D, H), jnp.float32, -1.0, 1.0) * s_enc
        w_dec = jax.random.uniform(k_dec, (H, D), jnp.float32, -1.0, 1.0) * s_dec
        b_enc = jax.random.uniform(k_benc, (H,), jnp.float32, -1.0, 1.0) * s_enc
        b_dec = jax.random.uniform(k_bdec, (D,), jnp.float32, -1.0, 1.0) * s_dec

        # Hidden dim lane-padded to 128 once at init (weights bf16, biases
        # f32); feature dim D stays un-padded — the kernel reads/writes the
        # real 32-wide data.
        self.w_enc_p = jnp.zeros((D, Hp), jnp.bfloat16).at[:, :H].set(
            w_enc.astype(jnp.bfloat16))
        self.b_enc_p = jnp.zeros((1, Hp), jnp.float32).at[0, :H].set(b_enc)
        self.w_dec_p = jnp.zeros((Hp, D), jnp.bfloat16).at[:H, :].set(
            w_dec.astype(jnp.bfloat16))
        self.b_dec_p = b_dec.reshape(1, D)

        # affine_hidden = nn.Linear(decoder_dim, decoder_dim): parameters are
        # created (as in __init__) but, matching the PyTorch forward, never
        # used in the forward pass.
        self.w_affine = jax.random.uniform(k_aff, (D, D), jnp.float32,
                                           -1.0, 1.0) * s_enc
        self.b_affine = jnp.zeros((1, D), jnp.float32)

    def __call__(self, x, force_kernel=False):
        """forward(*args) -> self.dae(*args)."""
        B, D = x.shape
        assert D == self.decoder_dim
        if force_kernel or B >= _XLA_BATCH_THRESHOLD:
            return _dae_forward_pallas(x, self.w_enc_p, self.b_enc_p,
                                       self.w_dec_p, self.b_dec_p,
                                       self.batch_tile)
        # Small batches: 1-2 step grid = pure launch/step overhead — let XLA fuse.
        return _dae_forward_xla(x, self.w_enc_p, self.b_enc_p,
                                self.w_dec_p, self.b_dec_p)

    def reference(self, x):
        """Pure-JAX reference with identical numerics (bf16 operands, f32 acc)."""
        return _dae_forward_xla(x, self.w_enc_p, self.b_enc_p,
                                self.w_dec_p, self.b_dec_p)


if __name__ == "__main__":
    key = jax.random.PRNGKey(0)
    B, D, H = 8, 32, 64

    model = DAEWithARPallas(decoder_dim=D, hidden_dim=H,
                            key=jax.random.PRNGKey(42))

    # Small-shape run: force the Pallas kernel path (single-step grid).
    x_small = jax.random.normal(key, (B, D), jnp.float32)
    out_small = jax.block_until_ready(model(x_small, force_kernel=True))
    ref_small = model.reference(x_small)
    assert out_small.shape == (B, D)
    assert jnp.allclose(out_small, ref_small, atol=1e-2, rtol=1e-2)

    # Non-multiple batch: exercises cdiv grid + masked partial final block
    # (no whole-tile batch padding, no junk-row work).
    x_odd = jax.random.normal(jax.random.PRNGKey(1), (300, D), jnp.float32)
    out_odd = jax.block_until_ready(model(x_odd, force_kernel=True))
    ref_odd = model.reference(x_odd)
    assert out_odd.shape == (300, D)
    assert jnp.allclose(out_odd, ref_odd, atol=1e-2, rtol=1e-2)

    # Larger batch: takes the kernel path naturally (>= threshold), multi-step
    # pipelined grid with VMEM-resident weights.
    x_big = jax.random.normal(jax.random.PRNGKey(2), (2048, D), jnp.float32)
    out_big = jax.block_until_ready(model(x_big))
    ref_big = model.reference(x_big)
    assert out_big.shape == (2048, D)
    assert jnp.allclose(out_big, ref_big, atol=1e-2, rtol=1e-2)

    print("KERNEL_OK")
</pallas_src>

<mosaic_0001>
module attributes {stable_mosaic.version = 11 : i64} {
  func.func @_dae_kernel(%arg0: i32, %arg1: memref<8x32xf32, #tpu.memory_space<vmem>>, %arg2: memref<32x128xbf16, #tpu.memory_space<vmem>>, %arg3: memref<1x128xf32, #tpu.memory_space<vmem>>, %arg4: memref<128x32xbf16, #tpu.memory_space<vmem>>, %arg5: memref<1x32xf32, #tpu.memory_space<vmem>>, %arg6: memref<8x32xf32, #tpu.memory_space<vmem>>) attributes {dimension_semantics = [#tpu.dimension_semantics<parallel>], iteration_bounds = array<i64: 1>, scalar_prefetch = 0 : i64, scratch_operands = 0 : i64, tpu.core_type = #tpu.core_type<tc>, window_params = [{transform_indices = @transform_0, window_bounds = array<i64: 8, 32>}, {pipeline_mode = #tpu.pipeline_mode<synchronous>, transform_indices = @transform_1, window_bounds = array<i64: 32, 128>}, {pipeline_mode = #tpu.pipeline_mode<synchronous>, transform_indices = @transform_2, window_bounds = array<i64: 1, 128>}, {pipeline_mode = #tpu.pipeline_mode<synchronous>, transform_indices = @transform_3, window_bounds = array<i64: 128, 32>}, {pipeline_mode = #tpu.pipeline_mode<synchronous>, transform_indices = @transform_4, window_bounds = array<i64: 1, 32>}, {transform_indices = @transform_5, window_bounds = array<i64: 8, 32>}]} {
    %c0 = arith.constant 0 : index
    %c0_0 = arith.constant 0 : index
    %0 = vector.load %arg1[%c0, %c0_0] : memref<8x32xf32, #tpu.memory_space<vmem>>, vector<8x32xf32>
    %1 = arith.truncf %0 : vector<8x32xf32> to vector<8x32xbf16>
    %c0_1 = arith.constant 0 : index
    %c0_2 = arith.constant 0 : index
    %2 = vector.load %arg2[%c0_1, %c0_2] : memref<32x128xbf16, #tpu.memory_space<vmem>>, vector<32x128xbf16>
    %cst = arith.constant dense<0.000000e+00> : vector<8x128xf32>
    %3 = tpu.matmul %1, %2, %cst {dimension_numbers = #tpu.dot_dimension_numbers<[1], [0], [0], [1], [0, 0, 1, 1], [], []>} : vector<8x32xbf16>, vector<32x128xbf16>, vector<8x128xf32> -> vector<8x128xf32>
    %c0_3 = arith.constant 0 : index
    %c0_4 = arith.constant 0 : index
    %4 = vector.load %arg3[%c0_3, %c0_4] : memref<1x128xf32, #tpu.memory_space<vmem>>, vector<1x128xf32>
    %5 = vector.broadcast %4 : vector<1x128xf32> to vector<8x128xf32>
    %6 = arith.addf %3, %5 : vector<8x128xf32>
    %cst_5 = arith.constant 0.000000e+00 : f32
    %7 = vector.broadcast %cst_5 : f32 to vector<8x128xf32>
    %8 = arith.maximumf %6, %7 : vector<8x128xf32>
    %9 = arith.truncf %8 : vector<8x128xf32> to vector<8x128xbf16>
    %c0_6 = arith.constant 0 : index
    %c0_7 = arith.constant 0 : index
    %10 = vector.load %arg4[%c0_6, %c0_7] : memref<128x32xbf16, #tpu.memory_space<vmem>>, vector<128x32xbf16>
    %cst_8 = arith.constant dense<0.000000e+00> : vector<8x32xf32>
    %11 = tpu.matmul %9, %10, %cst_8 {dimension_numbers = #tpu.dot_dimension_numbers<[1], [0], [0], [1], [0, 0, 1, 1], [], []>} : vector<8x128xbf16>, vector<128x32xbf16>, vector<8x32xf32> -> vector<8x32xf32>
    %c0_9 = arith.constant 0 : index
    %c0_10 = arith.constant 0 : index
    %12 = vector.load %arg5[%c0_9, %c0_10] : memref<1x32xf32, #tpu.memory_space<vmem>>, vector<1x32xf32>
    %13 = vector.broadcast %12 : vector<1x32xf32> to vector<8x32xf32>
    %14 = arith.addf %11, %13 : vector<8x32xf32>
    %c0_11 = arith.constant 0 : index
    %c0_12 = arith.constant 0 : index
    %15 = vector.load %arg6[%c0_11, %c0_12] : memref<8x32xf32, #tpu.memory_space<vmem>>, vector<8x32xf32>
    tpu.vector_store %arg6[%c0_11, %c0_12], %14 {strides = array<i32>} : memref<8x32xf32, #tpu.memory_space<vmem>>, vector<8x32xf32>,
    return
  }
  func.func @transform_0(%arg0: i32) -> (i32, i32) {
    %c0_i32 = arith.constant 0 : i32
    %c0_i32_0 = arith.constant 0 : i32
    return %arg0, %c0_i32 : i32, i32
  }
  func.func @transform_1(%arg0: i32) -> (i32, i32) {
    %c0_i32 = arith.constant 0 : i32
    %c0_i32_0 = arith.constant 0 : i32
    %c0_i32_1 = arith.constant 0 : i32
    return %c0_i32, %c0_i32_0 : i32, i32
  }
  func.func @transform_2(%arg0: i32) -> (i32, i32) {
    %c0_i32 = arith.constant 0 : i32
    %c0_i32_0 = arith.constant 0 : i32
    %c0_i32_1 = arith.constant 0 : i32
    return %c0_i32, %c0_i32_0 : i32, i32
  }
  func.func @transform_3(%arg0: i32) -> (i32, i32) {
    %c0_i32 = arith.constant 0 : i32
    %c0_i32_0 = arith.constant 0 : i32
    %c0_i32_1 = arith.constant 0 : i32
    return %c0_i32, %c0_i32_0 : i32, i32
  }
  func.func @transform_4(%arg0: i32) -> (i32, i32) {
    %c0_i32 = arith.constant 0 : i32
    %c0_i32_0 = arith.constant 0 : i32
    %c0_i32_1 = arith.constant 0 : i32
    return %c0_i32, %c0_i32_0 : i32, i32
  }
  func.func @transform_5(%arg0: i32) -> (i32, i32) {
    %c0_i32 = arith.constant 0 : i32
    %c0_i32_0 = arith.constant 0 : i32
    return %arg0, %c0_i32 : i32, i32
  }
}

</mosaic_0001>

<bundles_post_ra>
// kernel: _dae_forward_pallas.1
= control target key start
LH: loop header
LB: loop body
LE: loop exit
PB: predicated region body
PF: predicated region fallthrough
CT: control target
= control target key end

     0   :  { %v309_v1 = vmov 0.0   ;;  %vm310_vm0 = vmmov 0   ;;  %vm47_vm1 = vcmask 261120   ;;  %s395_s0 = inlined_call_operand.vmem [shape: f32[8,32], index: 0, kind: input, shape index: {}]   ;;  %s396_s1 = inlined_call_operand.vmem [shape: bf16[32,128], index: 1, kind: input, shape index: {}]   ;;  %s397_s2 = inlined_call_operand.vmem [shape: f32[1,128], index: 2, kind: input, shape index: {}]   ;;  %s398_s3 = inlined_call_operand.vmem [shape: bf16[128,32], index: 3, kind: input, shape index: {}]   ;;  %s399_s4 = inlined_call_operand.vmem [shape: f32[1,32], index: 4, kind: input, shape index: {}]   ;;  %s400_s5 = inlined_call_operand.hbm [shape: f32[8,32], index: 5, kind: output, shape index: {}]  }
   0x1   :  { %v275_v0 = vld [vmem:[%s396_s1] sm:$0xff]   ;;  %244 = vmatprep.subr.bf16.mxu0 %v309_v1  ;;  %v276_v2 = vld [vmem:[%s396_s1 + $0x8] sm:$0xff]   ;;  %252 = vmatprep.subr.bf16.mxu1 %v309_v1  ;;  %v279_v7 = vld [vmem:[%s398_s3 + $0x10] sm:$0xff]  }
   0x2   :  { %245 = vmatpush3.bf16.msra.mxu0 %v275_v0  ;;  %248 = vmatprep.mubr.msk.bf16.mxu0 %vm310_vm0, %v309_v1  ;;  %v22_v3 = vld [vmem:[%s395_s0] sm:$0xff]  ;;  %v278_v6 = vld [vmem:[%s398_s3 + $0x8] sm:$0xff]  }
   0x3   :  { %246 = vmatprep.subr.bf16.mxu0 %v309_v1  ;;  %v277_v4 = vld [vmem:[%s398_s3] sm:$0xff]   ;;  %268 = vmatprep.mubr.msk.bf16.mxu1 %vm310_vm0, %v309_v1  ;;  %v23_v5 = vpack.c.bf16 %v22_v3, %v22_v3 }
   0x4   :  { %253 = vmatpush3.bf16.msra.mxu1 %v277_v4 }
   0x5   :  { %254 = vmatprep.subr.bf16.mxu1 %v309_v1 }
   0x6   :  { %247 = vmatpush3.bf16.msra.mxu0 %v276_v2 }
   0x8   :  { %255 = vmatpush3.bf16.msra.mxu1 %v278_v6 }
   0x9   :  { %249 = vmatmul.mubr.msk.bf16.vlgmr.msra.gmra.mrb[0].mxu0 %vm47_vm1, %v23_v5  ;;  %256 = vmatprep.subr.bf16.mxu1 %v309_v1 }
   0xa   :  { %10 = vsyncpa [#allocation3], 0  ;;  %v280_v8 = vld [vmem:[%s398_s3 + $0x18] sm:$0xff]   ;;  %v281_v9 = vld [vmem:[%s398_s3 + $0x20] sm:$0xff]   ;;  %s311_s17 = smov [#allocation2]  }
   0xb   :  { %v282_v10 = vld [vmem:[%s398_s3 + $0x28] sm:$0xff]   ;;  %v283_v11 = vld [vmem:[%s398_s3 + $0x30] sm:$0xff]   ;;  %v284_v12 = vld [vmem:[%s398_s3 + $0x38] sm:$0xff]   ;;  %s211_s18 = sshll.u32 %s311_s17, 4  ;;  %s212_s18 = int_to_ptr.vmem [resolvable:$true] %s211_s18 }
   0xc   :  { %257 = vmatpush3.bf16.msra.mxu1 %v279_v7  ;;  %v219_v13 = vld [vmem:[%s397_s2] ss:$0 sm:$0xff]  ;;  %s285_s2 = scalar_lea.vmem %s212_s18, 128  ;;  %p290_p1 = scmp.lt.s32.totalorder %s212_s18, %s212_s18 }
   0xd   :  { %258 = vmatprep.subr.bf16.mxu1 %v309_v1  ;;  %v223_v21 = vld [vmem:[%s399_s4] ss:$0 sm:$0xff]  ;;  %p286_p0 = scmp.ne.s32.totalorder %s212_s18, %s285_s2  ;;  %p291_p2 = scmp.lt.s32.totalorder %s285_s2, %s285_s2 }
   0xf   :  { %p292_p3 = por %p291_p2, %p290_p1 }
  0x10   :  { %259 = vmatpush3.bf16.msra.mxu1 %v280_v8 }
  0x11   :  { %260 = vmatprep.subr.bf16.mxu1 %v309_v1  ;;  %p293_p4 = pnand %p292_p3, %p286_p0 }
  0x14   :  { %261 = vmatpush3.bf16.msra.mxu1 %v281_v9 }
  0x15   :  { %262 = vmatprep.subr.bf16.mxu1 %v309_v1 }
  0x18   :  { %263 = vmatpush3.bf16.msra.mxu1 %v282_v10 }
  0x19   :  { %264 = vmatprep.subr.bf16.mxu1 %v309_v1 }
  0x1c   :  { %265 = vmatpush3.bf16.msra.mxu1 %v283_v11 }
  0x1d   :  { %266 = vmatprep.subr.bf16.mxu1 %v309_v1 }
  0x20   :  { %267 = vmatpush3.bf16.msra.mxu1 %v284_v12 }
  0xdc   :  { %v85_v14 = vpop.f32.mrb[0].mxu0 }
  0xdd   :  { %v86_v15 = vadd.f32 %v219_v13, %v85_v14  ;;  %v250_v16 = vpop.f32.mrb[1].mxu0 }
  0xde   :  { %v88_v17 = vpop.f32.mrb[2].mxu0 }
  0xdf   :  { %v91_v18 = vmax.f32 %v86_v15, 0.0  ;;  %v251_v19 = vpop.f32.mrb[3].mxu0 }
  0xe1   :  { %v92_v20 = vpack.c.bf16 %v91_v18, %v91_v18 }
  0xe3   :  { %269 = vmatmul.mubr.bf16.vlgmr.msra.gmra.mrb[0].mxu1 %v92_v20 }
 0x1b6   :  { %v198_v22 = vpop.f32.mrb[0].mxu1 }
 0x1b7   :  { %v199_v23 = vadd.f32 %v223_v21, %v198_v22  ;;  %v270_v24 = vpop.f32.mrb[1].mxu1 }
 0x1b8   :  { %v201_v25 = vpop.f32.mrb[2].mxu1 }
 0x1b9   :  { %204 = vst.msk [vmem:[#allocation2] sm:$0xff] %vm47_vm1, %v199_v23  ;;  %v271_v26 = vpop.f32.mrb[3].mxu1 }
 0x1ba   :  { %296 = shalt.err (!%p293_p4)
}
 0x1bb   :  { %s297_s4 = scalar_lea.hbm %s400_s5, 128 }
 0x1bc   :  { %p298_p5 = scmp.ne.s32.totalorder %s400_s5, %s297_s4  ;;  %p301_p6 = scmp.lt.u32.totalorder %s297_s4, %s400_s5 }
 0x1be   :  { %p303_p7 = pnand %p301_p6, %p298_p5 }
 0x1c0   :  { %306 = shalt.err (!%p303_p7)
}
 0x1c1   :  { %214 = dma.vmem_to_hbm [thread:$0]  %s212_s18, 128, %s400_s5, [#allocation3]  }
 0x1c2   :  { %307 = dma.done.wait [#allocation3], 128  }
 0x1c3   :  { %308 = vsyncadd [#allocation3], 4294967168 }
 0x1c4   :  { %218 = vsyncpa [#allocation3], 1 }

</bundles_post_ra>
